<compile_context>
chip_gen: v7x
topology: tpu7x:2x2x1
jax: 0.10.0
libtpu: 0.0.40
codegen_flags: <defaults>
</compile_context>

<pallas_src>
import jax
import jax.numpy as jnp
from jax.experimental import pallas as pl
from jax.experimental.pallas import tpu as pltpu

LANE = 128
SUBLANE = 8


def _round_up(n, m):
    return ((n + m - 1) // m) * m


def _pick_batch_tile(B):
    """Batch tile: tiny -> single 8-row tile; mid -> >=2 tiles (v7x 2-TC);
    large -> 256-row tiles (fills the 256-wide MXU on v6e/v7x)."""
    b8 = _round_up(B, SUBLANE)
    if b8 <= 16:
        return b8
    if b8 <= 512:
        return _round_up(pl.cdiv(b8, 2), SUBLANE)
    return 256


def ddpg_actor_kernel(x_ref, w1_ref, b1_ref, w2_ref, b2_ref, w3_ref, b3_ref,
                      o_ref):
    # fc1 + ReLU  (bf16 MXU inputs, f32 accumulate)
    h1 = jnp.dot(x_ref[...], w1_ref[...],
                 preferred_element_type=jnp.float32) + b1_ref[...]
    h1 = jnp.maximum(h1, 0.0).astype(jnp.bfloat16)
    # fc2 + ReLU
    h2 = jnp.dot(h1, w2_ref[...],
                 preferred_element_type=jnp.float32) + b2_ref[...]
    h2 = jnp.maximum(h2, 0.0).astype(jnp.bfloat16)
    # fc3 + Tanh (tanh rides the EUP slot, free w.r.t. the MXU)
    h3 = jnp.dot(h2, w3_ref[...],
                 preferred_element_type=jnp.float32) + b3_ref[...]
    o_ref[...] = jnp.tanh(h3).astype(o_ref.dtype)


def ddpg_actor_forward(x, params, act_size):
    """x: (B, obs_size) float32.  params: padded bf16 weights / f32 biases."""
    w1, b1 = params["w1"], params["b1"]
    w2, b2 = params["w2"], params["b2"]
    w3, b3 = params["w3"], params["b3"]

    B, obs = x.shape
    IN_P, H1 = w1.shape          # obs rounded up to 8, 512
    H2 = w2.shape[1]             # 384
    OUT_P = w3.shape[1]          # act rounded up to 128

    tb = _pick_batch_tile(B)
    b_pad = _round_up(B, tb)

    # Pad batch to the tile and cast to bf16 in one fused op.  The obs dim is
    # only padded to a sublane multiple (usually a no-op), never to 128 lanes,
    # so no blown-up f32 copy of x is materialized in HBM.
    x_p = jnp.pad(x, ((0, b_pad - B), (0, IN_P - obs))).astype(jnp.bfloat16)

    out = pl.pallas_call(
        ddpg_actor_kernel,
        out_shape=jax.ShapeDtypeStruct((b_pad, OUT_P), jnp.bfloat16),
        grid=(b_pad // tb,),
        in_specs=[
            # activation tiles pipeline over the batch grid axis
            pl.BlockSpec((tb, IN_P), lambda i: (i, 0)),
            # weights / biases: constant block index -> stay VMEM-resident
            pl.BlockSpec((IN_P, H1), lambda i: (0, 0)),
            pl.BlockSpec((1, H1), lambda i: (0, 0)),
            pl.BlockSpec((H1, H2), lambda i: (0, 0)),
            pl.BlockSpec((1, H2), lambda i: (0, 0)),
            pl.BlockSpec((H2, OUT_P), lambda i: (0, 0)),
            pl.BlockSpec((1, OUT_P), lambda i: (0, 0)),
        ],
        out_specs=pl.BlockSpec((tb, OUT_P), lambda i: (i, 0)),  # lane-dense
        compiler_params=pltpu.CompilerParams(
            dimension_semantics=("parallel",),
            vmem_limit_bytes=32 << 20,
        ),
    )(x_p, w1, b1, w2, b2, w3, b3)

    return out[:B, :act_size].astype(jnp.float32)


def init_params(key, obs_size, act_size):
    """PyTorch-Linear-style init at true shapes, then zero-pad.

    Weights are stored (in, out) so the kernel computes y = x @ W + b and are
    cast to bf16 (halves the dominant HBM->VMEM weight DMA).  Biases stay f32.
    Input dim pads to a sublane multiple; hidden/output dims pad to 128 lanes.
    """
    ks = jax.random.split(key, 6)

    in_p = _round_up(obs_size, SUBLANE)  # 16  -> 16
    h1_p = _round_up(400, LANE)          # 400 -> 512
    h2_p = _round_up(300, LANE)          # 300 -> 384
    out_p = _round_up(act_size, LANE)    # 8   -> 128

    def linear(kw, kb, fan_in, fan_out, fan_in_p, fan_out_p):
        bound = float(fan_in) ** -0.5
        w = jax.random.uniform(kw, (fan_in, fan_out), jnp.float32, -bound, bound)
        b = jax.random.uniform(kb, (1, fan_out), jnp.float32, -bound, bound)
        w = jnp.pad(w, ((0, fan_in_p - fan_in), (0, fan_out_p - fan_out)))
        b = jnp.pad(b, ((0, 0), (0, fan_out_p - fan_out)))
        return w.astype(jnp.bfloat16), b

    w1, b1 = linear(ks[0], ks[1], obs_size, 400, in_p, h1_p)
    w2, b2 = linear(ks[2], ks[3], 400, 300, h1_p, h2_p)
    w3, b3 = linear(ks[4], ks[5], 300, act_size, h2_p, out_p)
    return {"w1": w1, "b1": b1, "w2": w2, "b2": b2, "w3": w3, "b3": b3}


def reference_forward(x, params, act_size):
    """Pure-JAX reference mirroring the kernel's bf16-input / f32-accumulate math."""
    in_p = params["w1"].shape[0]
    xb = jnp.pad(x, ((0, 0), (0, in_p - x.shape[1]))).astype(jnp.bfloat16)
    h1 = jnp.maximum(
        jnp.dot(xb, params["w1"], preferred_element_type=jnp.float32)
        + params["b1"], 0.0)
    h2 = jnp.maximum(
        jnp.dot(h1.astype(jnp.bfloat16), params["w2"],
                preferred_element_type=jnp.float32) + params["b2"], 0.0)
    h3 = jnp.dot(h2.astype(jnp.bfloat16), params["w3"],
                 preferred_element_type=jnp.float32) + params["b3"]
    return jnp.tanh(h3)[:, :act_size]


if __name__ == "__main__":
    obs_size, act_size, batch = 16, 8, 2
    key = jax.random.PRNGKey(0)
    k_x, k_p = jax.random.split(key)

    x = jax.random.normal(k_x, (batch, obs_size), jnp.float32)
    params = init_params(k_p, obs_size, act_size)

    fwd = jax.jit(ddpg_actor_forward, static_argnames=("act_size",))
    out = jax.block_until_ready(fwd(x, params, act_size=act_size))

    ref = reference_forward(x, params, act_size)
    assert out.shape == (batch, act_size)
    assert jnp.allclose(out, ref, atol=2e-2, rtol=2e-2), float(
        jnp.max(jnp.abs(out - ref)))

    print("KERNEL_OK")
</pallas_src>

<mosaic_0001>
module attributes {stable_mosaic.version = 11 : i64} {
  func.func @ddpg_actor_kernel(%arg0: i32, %arg1: memref<8x16xbf16, #tpu.memory_space<vmem>>, %arg2: memref<16x512xbf16, #tpu.memory_space<vmem>>, %arg3: memref<1x512xf32, #tpu.memory_space<vmem>>, %arg4: memref<512x384xbf16, #tpu.memory_space<vmem>>, %arg5: memref<1x384xf32, #tpu.memory_space<vmem>>, %arg6: memref<384x128xbf16, #tpu.memory_space<vmem>>, %arg7: memref<1x128xf32, #tpu.memory_space<vmem>>, %arg8: memref<8x128xbf16, #tpu.memory_space<vmem>>) attributes {dimension_semantics = [#tpu.dimension_semantics<parallel>], iteration_bounds = array<i64: 1>, scalar_prefetch = 0 : i64, scratch_operands = 0 : i64, tpu.core_type = #tpu.core_type<tc>, window_params = [{transform_indices = @transform_0, window_bounds = array<i64: 8, 16>}, {pipeline_mode = #tpu.pipeline_mode<synchronous>, transform_indices = @transform_1, window_bounds = array<i64: 16, 512>}, {pipeline_mode = #tpu.pipeline_mode<synchronous>, transform_indices = @transform_2, window_bounds = array<i64: 1, 512>}, {pipeline_mode = #tpu.pipeline_mode<synchronous>, transform_indices = @transform_3, window_bounds = array<i64: 512, 384>}, {pipeline_mode = #tpu.pipeline_mode<synchronous>, transform_indices = @transform_4, window_bounds = array<i64: 1, 384>}, {pipeline_mode = #tpu.pipeline_mode<synchronous>, transform_indices = @transform_5, window_bounds = array<i64: 384, 128>}, {pipeline_mode = #tpu.pipeline_mode<synchronous>, transform_indices = @transform_6, window_bounds = array<i64: 1, 128>}, {transform_indices = @transform_7, window_bounds = array<i64: 8, 128>}]} {
    %c0 = arith.constant 0 : index
    %c0_0 = arith.constant 0 : index
    %0 = vector.load %arg1[%c0, %c0_0] : memref<8x16xbf16, #tpu.memory_space<vmem>>, vector<8x16xbf16>
    %c0_1 = arith.constant 0 : index
    %c0_2 = arith.constant 0 : index
    %1 = vector.load %arg2[%c0_1, %c0_2] : memref<16x512xbf16, #tpu.memory_space<vmem>>, vector<16x512xbf16>
    %cst = arith.constant dense<0.000000e+00> : vector<8x512xf32>
    %2 = tpu.matmul %0, %1, %cst {dimension_numbers = #tpu.dot_dimension_numbers<[1], [0], [0], [1], [0, 0, 1, 1], [], []>} : vector<8x16xbf16>, vector<16x512xbf16>, vector<8x512xf32> -> vector<8x512xf32>
    %c0_3 = arith.constant 0 : index
    %c0_4 = arith.constant 0 : index
    %3 = vector.load %arg3[%c0_3, %c0_4] : memref<1x512xf32, #tpu.memory_space<vmem>>, vector<1x512xf32>
    %4 = vector.broadcast %3 : vector<1x512xf32> to vector<8x512xf32>
    %5 = arith.addf %2, %4 : vector<8x512xf32>
    %cst_5 = arith.constant 0.000000e+00 : f32
    %6 = vector.broadcast %cst_5 : f32 to vector<8x512xf32>
    %7 = arith.maximumf %5, %6 : vector<8x512xf32>
    %8 = arith.truncf %7 : vector<8x512xf32> to vector<8x512xbf16>
    %c0_6 = arith.constant 0 : index
    %c0_7 = arith.constant 0 : index
    %9 = vector.load %arg4[%c0_6, %c0_7] : memref<512x384xbf16, #tpu.memory_space<vmem>>, vector<512x384xbf16>
    %cst_8 = arith.constant dense<0.000000e+00> : vector<8x384xf32>
    %10 = tpu.matmul %8, %9, %cst_8 {dimension_numbers = #tpu.dot_dimension_numbers<[1], [0], [0], [1], [0, 0, 1, 1], [], []>} : vector<8x512xbf16>, vector<512x384xbf16>, vector<8x384xf32> -> vector<8x384xf32>
    %c0_9 = arith.constant 0 : index
    %c0_10 = arith.constant 0 : index
    %11 = vector.load %arg5[%c0_9, %c0_10] : memref<1x384xf32, #tpu.memory_space<vmem>>, vector<1x384xf32>
    %12 = vector.broadcast %11 : vector<1x384xf32> to vector<8x384xf32>
    %13 = arith.addf %10, %12 : vector<8x384xf32>
    %cst_11 = arith.constant 0.000000e+00 : f32
    %14 = vector.broadcast %cst_11 : f32 to vector<8x384xf32>
    %15 = arith.maximumf %13, %14 : vector<8x384xf32>
    %16 = arith.truncf %15 : vector<8x384xf32> to vector<8x384xbf16>
    %c0_12 = arith.constant 0 : index
    %c0_13 = arith.constant 0 : index
    %17 = vector.load %arg6[%c0_12, %c0_13] : memref<384x128xbf16, #tpu.memory_space<vmem>>, vector<384x128xbf16>
    %cst_14 = arith.constant dense<0.000000e+00> : vector<8x128xf32>
    %18 = tpu.matmul %16, %17, %cst_14 {dimension_numbers = #tpu.dot_dimension_numbers<[1], [0], [0], [1], [0, 0, 1, 1], [], []>} : vector<8x384xbf16>, vector<384x128xbf16>, vector<8x128xf32> -> vector<8x128xf32>
    %c0_15 = arith.constant 0 : index
    %c0_16 = arith.constant 0 : index
    %19 = vector.load %arg7[%c0_15, %c0_16] : memref<1x128xf32, #tpu.memory_space<vmem>>, vector<1x128xf32>
    %20 = vector.broadcast %19 : vector<1x128xf32> to vector<8x128xf32>
    %21 = arith.addf %18, %20 : vector<8x128xf32>
    %22 = math.tanh %21 : vector<8x128xf32>
    %23 = arith.truncf %22 : vector<8x128xf32> to vector<8x128xbf16>
    %c0_17 = arith.constant 0 : index
    %c0_18 = arith.constant 0 : index
    %24 = vector.load %arg8[%c0_17, %c0_18] : memref<8x128xbf16, #tpu.memory_space<vmem>>, vector<8x128xbf16>
    tpu.vector_store %arg8[%c0_17, %c0_18], %23 {strides = array<i32>} : memref<8x128xbf16, #tpu.memory_space<vmem>>, vector<8x128xbf16>,
    return
  }
  func.func @transform_0(%arg0: i32) -> (i32, i32) {
    %c0_i32 = arith.constant 0 : i32
    %c0_i32_0 = arith.constant 0 : i32
    return %arg0, %c0_i32 : i32, i32
  }
  func.func @transform_1(%arg0: i32) -> (i32, i32) {
    %c0_i32 = arith.constant 0 : i32
    %c0_i32_0 = arith.constant 0 : i32
    %c0_i32_1 = arith.constant 0 : i32
    return %c0_i32, %c0_i32_0 : i32, i32
  }
  func.func @transform_2(%arg0: i32) -> (i32, i32) {
    %c0_i32 = arith.constant 0 : i32
    %c0_i32_0 = arith.constant 0 : i32
    %c0_i32_1 = arith.constant 0 : i32
    return %c0_i32, %c0_i32_0 : i32, i32
  }
  func.func @transform_3(%arg0: i32) -> (i32, i32) {
    %c0_i32 = arith.constant 0 : i32
    %c0_i32_0 = arith.constant 0 : i32
    %c0_i32_1 = arith.constant 0 : i32
    return %c0_i32, %c0_i32_0 : i32, i32
  }
  func.func @transform_4(%arg0: i32) -> (i32, i32) {
    %c0_i32 = arith.constant 0 : i32
    %c0_i32_0 = arith.constant 0 : i32
    %c0_i32_1 = arith.constant 0 : i32
    return %c0_i32, %c0_i32_0 : i32, i32
  }
  func.func @transform_5(%arg0: i32) -> (i32, i32) {
    %c0_i32 = arith.constant 0 : i32
    %c0_i32_0 = arith.constant 0 : i32
    %c0_i32_1 = arith.constant 0 : i32
    return %c0_i32, %c0_i32_0 : i32, i32
  }
  func.func @transform_6(%arg0: i32) -> (i32, i32) {
    %c0_i32 = arith.constant 0 : i32
    %c0_i32_0 = arith.constant 0 : i32
    %c0_i32_1 = arith.constant 0 : i32
    return %c0_i32, %c0_i32_0 : i32, i32
  }
  func.func @transform_7(%arg0: i32) -> (i32, i32) {
    %c0_i32 = arith.constant 0 : i32
    %c0_i32_0 = arith.constant 0 : i32
    return %arg0, %c0_i32 : i32, i32
  }
}

</mosaic_0001>

<bundles_post_ra>
// kernel: ddpg_actor_forward.1
= control target key start
LH: loop header
LB: loop body
LE: loop exit
PB: predicated region body
PF: predicated region fallthrough
CT: control target
= control target key end

     0   :  { %12 = vsyncpa [#allocation3], 0  ;;  %s1922_s0 = inlined_call_operand.vmem [shape: bf16[8,16], index: 0, kind: input, shape index: {}]   ;;  %s1923_s1 = inlined_call_operand.hbm [shape: bf16[16,512], index: 1, kind: input, shape index: {}]   ;;  %s1924_s2 = inlined_call_operand.vmem [shape: f32[1,512], index: 2, kind: input, shape index: {}]   ;;  %s1925_s3 = inlined_call_operand.hbm [shape: bf16[512,384], index: 3, kind: input, shape index: {}]   ;;  %s1926_s4 = inlined_call_operand.vmem [shape: f32[1,384], index: 4, kind: input, shape index: {}]   ;;  %s1927_s5 = inlined_call_operand.hbm [shape: bf16[384,128], index: 5, kind: input, shape index: {}]   ;;  %s1928_s6 = inlined_call_operand.vmem [shape: f32[1,128], index: 6, kind: input, shape index: {}]   ;;  %s1929_s7 = inlined_call_operand.vmem [shape: bf16[8,128], index: 7, kind: output, shape index: {}]  }
   0x1   :  { %13 = vsyncpa [#allocation5], 0  ;;  %s1792_s24 = smov [#allocation4]   ;;  %s1722_s28 = scalar_lea.hbm %s1925_s3, 12288 }
   0x2   :  { %s35_s25 = sshll.u32 %s1792_s24, 4  ;;  %p1723_p0 = scmp.ne.s32.totalorder %s1925_s3, %s1722_s28  ;;  %s36_s25 = int_to_ptr.vmem [resolvable:$true] %s35_s25 }
   0x3   :  { %p1726_p1 = scmp.lt.u32.totalorder %s1722_s28, %s1925_s3 }
   0x5   :  { %p1728_p2 = pnand %p1726_p1, %p1723_p0 }
   0x7   :  { %1731 = shalt.err (!%p1728_p2)
}
   0x8   :  { %s1732_s10 = scalar_lea.vmem %s36_s25, 12288  ;;  %p1737_p4 = scmp.lt.s32.totalorder %s36_s25, %s36_s25 }
   0x9   :  { %p1733_p3 = scmp.ne.s32.totalorder %s36_s25, %s1732_s10  ;;  %p1738_p5 = scmp.lt.s32.totalorder %s1732_s10, %s1732_s10 }
   0xb   :  { %p1739_p6 = por %p1738_p5, %p1737_p4 }
   0xd   :  { %p1740_p7 = pnand %p1739_p6, %p1733_p3 }
   0xf   :  { %1743 = shalt.err (!%p1740_p7)
}
  0x10   :  { %s1793_s11 = smov 192   ;;  %s1794_s12 = smov 12  }
  0x11   :  { %41 = dma.hbm_to_vmem [thread:$0]  %s1925_s3, 12288, %s36_s25, [#allocation5], %s1793_s11, %s1793_s11, %s1794_s12  }
  0x12   :  { %s1795_s15 = smov [#allocation2]   ;;  %s1744_s19 = scalar_lea.hbm %s1923_s1, 512 }
  0x13   :  { %s21_s16 = sshll.u32 %s1795_s15, 4  ;;  %p1745_p8 = scmp.ne.s32.totalorder %s1923_s1, %s1744_s19  ;;  %s22_s16 = int_to_ptr.vmem [resolvable:$true] %s21_s16 }
  0x14   :  { %p1748_p9 = scmp.lt.u32.totalorder %s1744_s19, %s1923_s1 }
  0x16   :  { %p1750_p10 = pnand %p1748_p9, %p1745_p8 }
  0x18   :  { %1753 = shalt.err (!%p1750_p10)
}
  0x19   :  { %s1754_s24 = scalar_lea.vmem %s22_s16, 512  ;;  %p1759_p12 = scmp.lt.s32.totalorder %s22_s16, %s22_s16 }
  0x1a   :  { %p1755_p11 = scmp.ne.s32.totalorder %s22_s16, %s1754_s24  ;;  %p1760_p13 = scmp.lt.s32.totalorder %s1754_s24, %s1754_s24 }
  0x1c   :  { %p1761_p0 = por %p1760_p13, %p1759_p12 }
  0x1e   :  { %p1762_p1 = pnand %p1761_p0, %p1755_p11 }
  0x20   :  { %1765 = shalt.err (!%p1762_p1)
}
  0x21   :  { %s1796_s3 = smov 256   ;;  %s1797_s25 = smov 16  }
  0x22   :  { %27 = dma.hbm_to_vmem [thread:$0]  %s1923_s1, 512, %s22_s16, [#allocation3], %s1796_s3, %s1796_s3, %s1797_s25  }
  0x23   :  { %s1798_s28 = smov [#allocation6]   ;;  %s1766_s9 = scalar_lea.hbm %s1927_s5, 3072 }
  0x24   :  { %s49_s29 = sshll.u32 %s1798_s28, 4  ;;  %p1767_p2 = scmp.ne.s32.totalorder %s1927_s5, %s1766_s9  ;;  %s50_s29 = int_to_ptr.vmem [resolvable:$true] %s49_s29 }
  0x25   :  { %p1770_p3 = scmp.lt.u32.totalorder %s1766_s9, %s1927_s5 }
  0x27   :  { %p1772_p4 = pnand %p1770_p3, %p1767_p2 }
  0x29   :  { %1775 = shalt.err (!%p1772_p4)
}
  0x2a   :  { %s1776_s14 = scalar_lea.vmem %s50_s29, 3072  ;;  %p1781_p6 = scmp.lt.s32.totalorder %s50_s29, %s50_s29 }
  0x2b   :  { %p1777_p5 = scmp.ne.s32.totalorder %s50_s29, %s1776_s14  ;;  %p1782_p7 = scmp.lt.s32.totalorder %s1776_s14, %s1776_s14 }
  0x2d   :  { %p1783_p8 = por %p1782_p7, %p1781_p6 }
  0x2f   :  { %p1784_p9 = pnand %p1783_p8, %p1777_p5 }
  0x31   :  { %1787 = shalt.err (!%p1784_p9)
}
  0x32   :  { %s1799_s1 = smov 64   ;;  %s1800_s15 = smov 4  }
  0x33   :  { %55 = dma.hbm_to_vmem [thread:$0]  %s1927_s5, 3072, %s50_s29, [#allocation5], %s1799_s1, %s1799_s1, %s1800_s15  }
  0x34   :  { %1788 = dma.done.wait [#allocation3], 512  }
  0x35   :  { %1789 = vsyncadd [#allocation3], 4294966784 }
  0x36   :  { %1790 = dma.done.wait [#allocation5], 15360  }
  0x37   :  { %1791 = vsyncadd [#allocation5], 4294951936  ;;  %v1801_v0 = vmov 0   ;;  %v1562_v1 = vld [vmem:[#allocation2 + $0x4] ss:$16 sps:$4 sm:$0xff]   ;;  %vm115_vm0 = vcmask 130048   ;;  %v75_v56 = vlaneseq }
  0x38   :  { %151 = vmatprep.mubr.bf16.mxu0 %v1801_v0  ;;  %192 = vmatprep.mubr.bf16.mxu1 %v1801_v0  ;;  %v1564_v2 = vld [vmem:[#allocation2] ss:$16 sps:$4 sm:$0xff]   ;;  %v1565_v4 = vld [vmem:[#allocation2 + $0xc] ss:$16 sps:$4 sm:$0xff]   ;;  %v1567_v5 = vld [vmem:[#allocation2 + $0x8] ss:$16 sps:$4 sm:$0xff]  }
  0x39   :  { %v68_v3 = vld [vmem:[%s1922_s0] sm:$0xf]  ;;  %119 = vmatprep.subr.bf16.mxu0 %v1562_v1  ;;  %160 = vmatprep.subr.bf16.mxu1 %v1565_v4  ;;  %v1570_v7 = vld [vmem:[#allocation4 + $0x4] ss:$12 sps:$4 sm:$0xff]   ;;  %v1573_v8 = vld [vmem:[#allocation4 + $0x1c] ss:$12 sps:$4 sm:$0xff]  }
  0x3a   :  { %120 = vmatpush1.bf16.msra.mxu0 %v1564_v2  ;;  %v1568_v6 = vld [vmem:[#allocation4] ss:$12 sps:$4 sm:$0xff]   ;;  %161 = vmatpush1.bf16.msra.mxu1 %v1567_v5  ;;  %v1571_v9 = vld [vmem:[#allocation4 + $0x18] ss:$12 sps:$4 sm:$0xff]   ;;  %v1574_v11 = vld [vmem:[#allocation4 + $0x30] ss:$12 sps:$4 sm:$0xff]  }
  0x3b   :  { %866 = vmatprep.subr.bf16.mxu0 %v1570_v7  ;;  %v1576_v10 = vld [vmem:[#allocation4 + $0x34] ss:$12 sps:$4 sm:$0xff]   ;;  %v1579_v12 = vld [vmem:[#allocation4 + $0x4c] ss:$12 sps:$4 sm:$0xff]   ;;  %v1582_v14 = vld [vmem:[#allocation4 + $0x64] ss:$12 sps:$4 sm:$0xff]  }
  0x3c   :  { %v1577_v13 = vld [vmem:[#allocation4 + $0x48] ss:$12 sps:$4 sm:$0xff]   ;;  %v1580_v17 = vld [vmem:[#allocation4 + $0x60] ss:$12 sps:$4 sm:$0xff]   ;;  %v1583_v21 = vld [vmem:[#allocation4 + $0x78] ss:$12 sps:$4 sm:$0xff]  }
  0x3d   :  { %1326 = vmatmul.mubr.msk.bf16.vlgmr.msra.gmra.mrb[0].mxu0 %vm115_vm0, %v68_v3  ;;  %1327 = vmatmul.mubr.msk.bf16.vlgmr.msra.gmra.mrb[0].mxu1 %vm115_vm0, %v68_v3  ;;  %v1595_v15 = vld [vmem:[#allocation4 + $0xc8] ss:$12 sps:$4 sm:$0xff]   ;;  %v1600_v19 = vld [vmem:[#allocation4 + $0xe0] ss:$12 sps:$4 sm:$0xff]   ;;  %v1605_v22 = vld [vmem:[#allocation4 + $0xf8] ss:$12 sps:$4 sm:$0xff]  }
  0x3e   :  { %867 = vmatpush1.bf16.msra.mxu0 %v1568_v6  ;;  %v1596_v16 = vld [vmem:[#allocation4 + $0x8] ss:$12 sps:$4 sm:$0xff]   ;;  %1449 = vmatprep.subr.bf16.mxu1 %v1595_v15  ;;  %v1601_v20 = vld [vmem:[#allocation4 + $0x20] ss:$12 sps:$4 sm:$0xff]   ;;  %v1606_v23 = vld [vmem:[#allocation4 + $0x38] ss:$12 sps:$4 sm:$0xff]  }
  0x3f   :  { %868 = vmatprep.subr.bf16.mxu0 %v1573_v8  ;;  %v1585_v18 = vld [vmem:[#allocation4 + $0x7c] ss:$12 sps:$4 sm:$0xff]   ;;  %1450 = vmatpush3.bf16.msra.mxu1 %v1596_v16  ;;  %v1588_v24 = vld [vmem:[#allocation4 + $0x94] ss:$12 sps:$4 sm:$0xff]   ;;  %v1591_v28 = vld [vmem:[#allocation4 + $0xac] ss:$12 sps:$4 sm:$0xff]  }
  0x40   :  { %1451 = vmatprep.subr.bf16.mxu1 %v1600_v19  ;;  %v1610_v25 = vld [vmem:[#allocation4 + $0x110] ss:$12 sps:$4 sm:$0xff]   ;;  %v1615_v29 = vld [vmem:[#allocation4 + $0x128] ss:$12 sps:$4 sm:$0xff]   ;;  %v1620_v33 = vld [vmem:[#allocation4 + $0x140] ss:$12 sps:$4 sm:$0xff]  }
  0x41   :  { %v1611_v26 = vld [vmem:[#allocation4 + $0x50] ss:$12 sps:$4 sm:$0xff]   ;;  %v1616_v30 = vld [vmem:[#allocation4 + $0x68] ss:$12 sps:$4 sm:$0xff]   ;;  %v1592_v34 = vld [vmem:[#allocation4 + $0xc0] ss:$12 sps:$4 sm:$0xff]  }
  0x42   :  { %869 = vmatpush1.bf16.msra.mxu0 %v1571_v9  ;;  %v1586_v27 = vld [vmem:[#allocation4 + $0x90] ss:$12 sps:$4 sm:$0xff]   ;;  %v1589_v31 = vld [vmem:[#allocation4 + $0xa8] ss:$12 sps:$4 sm:$0xff]   ;;  %v1621_v35 = vld [vmem:[#allocation4 + $0x80] ss:$12 sps:$4 sm:$0xff]  }
  0x43   :  { %870 = vmatprep.subr.bf16.mxu0 %v1576_v10  ;;  %1452 = vmatpush3.bf16.msra.mxu1 %v1601_v20  ;;  %v1594_v32 = vld [vmem:[#allocation4 + $0xc4] ss:$12 sps:$4 sm:$0xff]   ;;  %v1599_v36 = vld [vmem:[#allocation4 + $0xdc] ss:$12 sps:$4 sm:$0xff]   ;;  %v1604_v38 = vld [vmem:[#allocation4 + $0xf4] ss:$12 sps:$4 sm:$0xff]  }
  0x44   :  { %1453 = vmatprep.subr.bf16.mxu1 %v1605_v22  ;;  %v1597_v37 = vld [vmem:[#allocation4 + $0xd8] ss:$12 sps:$4 sm:$0xff]   ;;  %v1602_v39 = vld [vmem:[#allocation4 + $0xf0] ss:$12 sps:$4 sm:$0xff]   ;;  %v1607_v41 = vld [vmem:[#allocation4 + $0x108] ss:$12 sps:$4 sm:$0xff]  }
  0x45   :  { %v1609_v40 = vld [vmem:[#allocation4 + $0x10c] ss:$12 sps:$4 sm:$0xff]   ;;  %v1614_v42 = vld [vmem:[#allocation4 + $0x124] ss:$12 sps:$4 sm:$0xff]   ;;  %v1619_v44 = vld [vmem:[#allocation4 + $0x13c] ss:$12 sps:$4 sm:$0xff]  }
  0x46   :  { %871 = vmatpush1.bf16.msra.mxu0 %v1574_v11  ;;  %v1612_v43 = vld [vmem:[#allocation4 + $0x120] ss:$12 sps:$4 sm:$0xff]   ;;  %v1617_v45 = vld [vmem:[#allocation4 + $0x138] ss:$12 sps:$4 sm:$0xff]   ;;  %v1622_v48 = vld [vmem:[#allocation4 + $0x150] ss:$12 sps:$4 sm:$0xff]  }
  0x47   :  { %872 = vmatprep.subr.bf16.mxu0 %v1579_v12  ;;  %1454 = vmatpush3.bf16.msra.mxu1 %v1606_v23  ;;  %v1624_v46 = vld [vmem:[#allocation4 + $0x154] ss:$12 sps:$4 sm:$0xff]   ;;  %v1625_v47 = vld [vmem:[#allocation4 + $0x158] ss:$12 sps:$4 sm:$0xff]   ;;  %v1630_v51 = vld [vmem:[#allocation4 + $0x170] ss:$12 sps:$4 sm:$0xff]  }
  0x48   :  { %1455 = vmatprep.subr.bf16.mxu1 %v1610_v25  ;;  %v1626_v49 = vld [vmem:[#allocation4 + $0x98] ss:$12 sps:$4 sm:$0xff]   ;;  %v1627_v52 = vld [vmem:[#allocation4 + $0x168] ss:$12 sps:$4 sm:$0xff]   ;;  %v1631_v53 = vld [vmem:[#allocation4 + $0xb0] ss:$12 sps:$4 sm:$0xff]  }
  0x49   :  { %v1629_v50 = vld [vmem:[#allocation4 + $0x16c] ss:$12 sps:$4 sm:$0xff]   ;;  %v1634_v54 = vld [vmem:[#allocation4 + $0x184] ss:$12 sps:$4 sm:$0xff]   ;;  %v1635_v55 = vld [vmem:[#allocation4 + $0x248] ss:$12 sps:$4 sm:$0xff]  }
  0x4a   :  { %873 = vmatpush1.bf16.msra.mxu0 %v1577_v13  ;;  %v1883_v57 = vshrl.u32 %v75_v56, 7  ;;  %v1889_v59 = vld [vmem:[%s1924_s2] sm:$0xf]  ;;  %v1636_v16 = vld [vmem:[#allocation4 + $0x188] ss:$12 sps:$4 sm:$0xff]   ;;  %vm1803_vm1 = vmmov 0  }
  0x4b   :  { %874 = vmatprep.subr.bf16.mxu0 %v1582_v14  ;;  %1456 = vmatpush3.bf16.msra.mxu1 %v1611_v26  ;;  %v1632_v15 = vld [vmem:[#allocation4 + $0x180] ss:$12 sps:$4 sm:$0xff]   ;;  %v1639_v19 = vld [vmem:[#allocation4 + $0x19c] ss:$12 sps:$4 sm:$0xff]   ;;  %v1637_v22 = vld [vmem:[#allocation4 + $0x198] ss:$12 sps:$4 sm:$0xff]  }
  0x4c   :  { %1457 = vmatprep.subr.bf16.mxu1 %v1615_v29  ;;  %v77_v58 = vsub.s32 0, %v1883_v57  ;;  %v81_v60 = vsub.s32 1, %v1883_v57  ;;  %v89_v61 = vsub.s32 3, %v1883_v57  ;;  %v1640_v20 = vld [vmem:[#allocation4 + $0x260] ss:$12 sps:$4 sm:$0xff]  }
  0x4d   :  { %v1641_v23 = vld [vmem:[#allocation4 + $0x1a0] ss:$12 sps:$4 sm:$0xff]   ;;  %v1645_v25 = vld [vmem:[#allocation4 + $0x278] ss:$12 sps:$4 sm:$0xff]   ;;  %v1642_v26 = vld [vmem:[#allocation4 + $0x1b0] ss:$12 sps:$4 sm:$0xff]  }
  0x4e   :  { %875 = vmatpush1.bf16.msra.mxu0 %v1580_v17  ;;  %v78_v62 = vrot.slane %v1889_v59, %v77_v58  ;;  %v82_v63 = vrot.slane %v1889_v59, %v81_v60  ;;  %v90_v1 = vrot.slane %v1889_v59, %v89_v61  ;;  %v1650_v29 = vld [vmem:[#allocation4 + $0x290] ss:$12 sps:$4 sm:$0xff]   ;;  %v1675_v56 = vld [vmem:[#allocation4 + $0x258] ss:$12 sps:$4 sm:$0xff]  }
  0x4f   :  { %876 = vmatprep.subr.bf16.mxu0 %v1585_v18  ;;  %1458 = vmatpush3.bf16.msra.mxu1 %v1616_v30  ;;  %v1647_v30 = vld [vmem:[#allocation4 + $0x1c8] ss:$12 sps:$4 sm:$0xff]   ;;  %v1678_v61 = vld [vmem:[#allocation4 + $0x270] ss:$12 sps:$4 sm:$0xff]  }
  0x50   :  { %1459 = vmatprep.subr.bf16.mxu1 %v1620_v33  ;;  %v1655_v33 = vld [vmem:[#allocation4 + $0x2a8] ss:$12 sps:$4 sm:$0xff]  }
  0x52   :  { %877 = vmatpush1.bf16.msra.mxu0 %v1583_v21 }
  0x53   :  { %878 = vmatprep.subr.bf16.mxu0 %v1588_v24  ;;  %1460 = vmatpush3.bf16.msra.mxu1 %v1621_v35  ;;  %v1644_v24 = vld [vmem:[#allocation4 + $0x1b4] ss:$12 sps:$4 sm:$0xff]  }
  0x54   :  { %1461 = vmatprep.subr.bf16.mxu1 %v1625_v47  ;;  %v1652_v35 = vld [vmem:[#allocation4 + $0x1e0] ss:$12 sps:$4 sm:$0xff]  }
  0x55   :  { %v1669_v47 = vld [vmem:[#allocation4 + $0x22c] ss:$12 sps:$4 sm:$0xff]  }
  0x56   :  { %879 = vmatpush1.bf16.msra.mxu0 %v1586_v27  ;;  %v1646_v27 = vld [vmem:[#allocation4 + $0x1b8] ss:$12 sps:$4 sm:$0xff]  }
  0x57   :  { %880 = vmatprep.subr.bf16.mxu0 %v1591_v28  ;;  %1462 = vmatpush3.bf16.msra.mxu1 %v1626_v49  ;;  %v1649_v28 = vld [vmem:[#allocation4 + $0x1cc] ss:$12 sps:$4 sm:$0xff]  }
  0x58   :  { %1463 = vmatprep.subr.bf16.mxu1 %v1630_v51  ;;  %v1671_v51 = vld [vmem:[#allocation4 + $0x230] ss:$12 sps:$4 sm:$0xff]  }
  0x5a   :  { %881 = vmatpush1.bf16.msra.mxu0 %v1589_v31  ;;  %v1651_v31 = vld [vmem:[#allocation4 + $0x1d0] ss:$12 sps:$4 sm:$0xff]  }
  0x5b   :  { %882 = vmatprep.subr.bf16.mxu0 %v1594_v32  ;;  %1464 = vmatpush3.bf16.msra.mxu1 %v1631_v53  ;;  %v1654_v32 = vld [vmem:[#allocation4 + $0x1e4] ss:$12 sps:$4 sm:$0xff]  }
  0x5c   :  { %1471 = vmatprep.subr.bf16.mxu1 %v1635_v55  ;;  %v1677_v55 = vld [vmem:[#allocation4 + $0x25c] ss:$12 sps:$4 sm:$0xff]  }
  0x5e   :  { %883 = vmatpush1.bf16.msra.mxu0 %v1592_v34  ;;  %v85_v34 = vsub.s32 2, %v1883_v57  ;;  %v1714_v57 = vld [vmem:[#allocation6 + $0x90] sm:$0xff]  }
  0x5f   :  { %884 = vmatprep.subr.bf16.mxu0 %v1599_v36  ;;  %v1656_v36 = vld [vmem:[#allocation4 + $0x1e8] ss:$12 sps:$4 sm:$0xff]  }
  0x62   :  { %885 = vmatpush1.bf16.msra.mxu0 %v1597_v37  ;;  %v1659_v37 = vld [vmem:[#allocation4 + $0x1fc] ss:$12 sps:$4 sm:$0xff]  }
  0x63   :  { %886 = vmatprep.subr.bf16.mxu0 %v1604_v38  ;;  %v1660_v38 = vld [vmem:[#allocation4 + $0x2c0] ss:$12 sps:$4 sm:$0xff]  }
  0x66   :  { %887 = vmatpush1.bf16.msra.mxu0 %v1602_v39  ;;  %v86_v39 = vrot.slane %v1889_v59, %v85_v34  ;;  %v1680_v59 = vld [vmem:[#allocation4 + $0x274] ss:$12 sps:$4 sm:$0xff]  }
  0x67   :  { %888 = vmatprep.subr.bf16.mxu0 %v1609_v40  ;;  %v1657_v40 = vld [vmem:[#allocation4 + $0x1f8] ss:$12 sps:$4 sm:$0xff]  }
  0x6a   :  { %889 = vmatpush1.bf16.msra.mxu0 %v1607_v41  ;;  %v1661_v41 = vld [vmem:[#allocation4 + $0x200] ss:$12 sps:$4 sm:$0xff]  }
  0x6b   :  { %890 = vmatprep.subr.bf16.mxu0 %v1614_v42  ;;  %v1664_v42 = vld [vmem:[#allocation4 + $0x214] ss:$12 sps:$4 sm:$0xff]  }
  0x6e   :  { %891 = vmatpush1.bf16.msra.mxu0 %v1612_v43  ;;  %v1665_v43 = vld [vmem:[#allocation4 + $0x2d8] ss:$12 sps:$4 sm:$0xff]  }
  0x6f   :  { %892 = vmatprep.subr.bf16.mxu0 %v1619_v44 }
  0x72   :  { %893 = vmatpush1.bf16.msra.mxu0 %v1617_v45  ;;  %v1662_v45 = vld [vmem:[#allocation4 + $0x210] ss:$12 sps:$4 sm:$0xff]  }
  0x73   :  { %894 = vmatprep.subr.bf16.mxu0 %v1624_v46  ;;  %v1666_v46 = vld [vmem:[#allocation4 + $0x218] ss:$12 sps:$4 sm:$0xff]  }
  0x76   :  { %895 = vmatpush1.bf16.msra.mxu0 %v1622_v48  ;;  %v1670_v48 = vld [vmem:[#allocation4 + $0x2f0] ss:$12 sps:$4 sm:$0xff]  }
  0x77   :  { %896 = vmatprep.subr.bf16.mxu0 %v1629_v50  ;;  %v1667_v50 = vld [vmem:[#allocation4 + $0x228] ss:$12 sps:$4 sm:$0xff]  }
  0x7a   :  { %897 = vmatpush1.bf16.msra.mxu0 %v1627_v52  ;;  %v1674_v52 = vld [vmem:[#allocation4 + $0x244] ss:$12 sps:$4 sm:$0xff]  }
  0x7b   :  { %907 = vmatprep.subr.bf16.mxu0 %v1634_v54  ;;  %v1672_v54 = vld [vmem:[#allocation4 + $0x240] ss:$12 sps:$4 sm:$0xff]  }
 0x110   :  { %v153_v0 = vpop.f32.mrb[0].mxu0  ;;  %v1900_v6 = vpop.f32.mrb[0].mxu1 }
 0x111   :  { %v154_v2 = vadd.f32 %v153_v0, %v78_v62  ;;  %v155_v3 = vpop.f32.mrb[1].mxu0  ;;  %v196_v9 = vpop.f32.mrb[1].mxu1  ;;  %v195_v44 = vadd.f32 %v1900_v6, %v86_v39  ;;  %v1683_v62 = vld [vmem:[#allocation4 + $0x28c] ss:$12 sps:$4 sm:$0xff]   ;;  %v1686_v0 = vld [vmem:[#allocation4 + $0x2a4] ss:$12 sps:$4 sm:$0xff]  }
 0x112   :  { %v156_v4 = vadd.f32 %v155_v3, %v82_v63  ;;  %v157_v5 = vpop.f32.mrb[2].mxu0  ;;  %v197_v11 = vadd.f32 %v196_v9, %v90_v1  ;;  %v198_v12 = vpop.f32.mrb[2].mxu1  ;;  %v1681_v63 = vld [vmem:[#allocation4 + $0x288] ss:$12 sps:$4 sm:$0xff]   ;;  %v1684_v1 = vld [vmem:[#allocation4 + $0x2a0] ss:$12 sps:$4 sm:$0xff]  }
 0x113   :  { %v201_v7 = vmax.f32 %v154_v2, 0.0  ;;  %v158_v8 = vpop.f32.mrb[3].mxu0  ;;  %v199_v13 = vpop.f32.mrb[3].mxu1  ;;  %v203_v49 = vmax.f32 %v195_v44, 0.0  ;;  %v1689_v2 = vld [vmem:[#allocation4 + $0x2bc] ss:$12 sps:$4 sm:$0xff]  }
 0x114   :  { %v202_v10 = vmax.f32 %v156_v4, 0.0  ;;  %v204_v17 = vmax.f32 %v197_v11, 0.0  ;;  %v1687_v3 = vld [vmem:[#allocation4 + $0x2b8] ss:$12 sps:$4 sm:$0xff]   ;;  %v1692_v4 = vld [vmem:[#allocation4 + $0x2d4] ss:$12 sps:$4 sm:$0xff]  }
 0x115   :  { %v205_v18 = vpack.c.bf16 %v201_v7, %v201_v7  ;;  %v207_v53 = vpack.c.bf16 %v203_v49, %v203_v49  ;;  %v1690_v5 = vld [vmem:[#allocation4 + $0x2d0] ss:$12 sps:$4 sm:$0xff]   ;;  %v1695_v6 = vld [vmem:[#allocation4 + $0x2ec] ss:$12 sps:$4 sm:$0xff]   ;;  %v1693_v7 = vld [vmem:[#allocation4 + $0x2e8] ss:$12 sps:$4 sm:$0xff]  }
 0x116   :  { %v206_v14 = vpack.c.bf16 %v202_v10, %v202_v10  ;;  %v208_v21 = vpack.c.bf16 %v204_v17, %v204_v17  ;;  %v1696_v8 = vld [vmem:[#allocation6 + $0x40] sm:$0xff]   ;;  %v1698_v10 = vld [vmem:[#allocation6 + $0x48] sm:$0xff]   ;;  %v1700_v12 = vld [vmem:[#allocation6 + $0x50] sm:$0xff]  }
 0x117   :  { %v1697_v9 = vld [vmem:[#allocation6] sm:$0xff]   ;;  %v1699_v11 = vld [vmem:[#allocation6 + $0x8] sm:$0xff]   ;;  %v1701_v13 = vld [vmem:[#allocation6 + $0x10] sm:$0xff]  }
 0x118   :  { %898 = vmatprep.mubr.bf16.mxu0 %v206_v14  ;;  %980 = vmatprep.mubr.bf16.mxu1 %v206_v14  ;;  %v1702_v14 = vld [vmem:[#allocation6 + $0x58] sm:$0xff]   ;;  %v1705_v17 = vld [vmem:[#allocation6 + $0x20] sm:$0xff]  }
 0x119   :  { %899 = vmatmul.mubr.bf16.vlgmr.msra.gmra.mrb[4].mxu0 %v205_v18  ;;  %981 = vmatmul.mubr.bf16.vlgmr.msra.gmra.mrb[4].mxu1 %v205_v18  ;;  %v1706_v18 = vld [vmem:[#allocation6 + $0x68] sm:$0xff]  }
 0x11a   :  { %908 = vmatpush1.bf16.msra.mxu0 %v1632_v15  ;;  %1472 = vmatpush3.bf16.msra.mxu1 %v1636_v16  ;;  %v1703_v15 = vld [vmem:[#allocation6 + $0x18] sm:$0xff]   ;;  %v1704_v16 = vld [vmem:[#allocation6 + $0x60] sm:$0xff]  }
 0x11b   :  { %909 = vmatprep.subr.bf16.mxu0 %v1639_v19  ;;  %1473 = vmatprep.subr.bf16.mxu1 %v1640_v20  ;;  %v1707_v19 = vld [vmem:[#allocation6 + $0x28] sm:$0xff]   ;;  %v1708_v20 = vld [vmem:[#allocation6 + $0x70] sm:$0xff]  }
 0x11c   :  { %1020 = vmatprep.mubr.bf16.mxu1 %v208_v21  ;;  %939 = vmatprep.mubr.bf16.mxu0 %v208_v21  ;;  %v1709_v21 = vld [vmem:[#allocation6 + $0x30] sm:$0xff]  }
 0x11e   :  { %910 = vmatpush1.bf16.msra.mxu0 %v1637_v22  ;;  %1474 = vmatpush3.bf16.msra.mxu1 %v1641_v23  ;;  %v1710_v22 = vld [vmem:[#allocation6 + $0x78] sm:$0xff]  }
 0x11f   :  { %911 = vmatprep.subr.bf16.mxu0 %v1644_v24  ;;  %1475 = vmatprep.subr.bf16.mxu1 %v1645_v25  ;;  %v1711_v23 = vld [vmem:[#allocation6 + $0x38] sm:$0xff]   ;;  %v1802_v24 = vmov 0.0  }
 0x122   :  { %912 = vmatpush1.bf16.msra.mxu0 %v1642_v26  ;;  %1476 = vmatpush3.bf16.msra.mxu1 %v1646_v27 }
 0x123   :  { %913 = vmatprep.subr.bf16.mxu0 %v1649_v28  ;;  %1477 = vmatprep.subr.bf16.mxu1 %v1650_v29 }
 0x126   :  { %914 = vmatpush1.bf16.msra.mxu0 %v1647_v30  ;;  %1478 = vmatpush3.bf16.msra.mxu1 %v1651_v31  ;;  %v337_v30 = vld [vmem:[%s1926_s4] sm:$0x7] }
 0x127   :  { %915 = vmatprep.subr.bf16.mxu0 %v1654_v32  ;;  %1479 = vmatprep.subr.bf16.mxu1 %v1655_v33  ;;  %v350_v31 = vrot.slane %v337_v30, %v85_v34 }
 0x12a   :  { %916 = vmatpush1.bf16.msra.mxu0 %v1652_v35  ;;  %1480 = vmatpush3.bf16.msra.mxu1 %v1656_v36 }
 0x12b   :  { %917 = vmatprep.subr.bf16.mxu0 %v1659_v37  ;;  %1481 = vmatprep.subr.bf16.mxu1 %v1660_v38 }
 0x12e   :  { %918 = vmatpush1.bf16.msra.mxu0 %v1657_v40  ;;  %1482 = vmatpush3.bf16.msra.mxu1 %v1661_v41  ;;  %v342_v40 = vrot.slane %v337_v30, %v77_v58  ;;  %v346_v41 = vrot.slane %v337_v30, %v81_v60  ;;  %v1715_v58 = vld [vmem:[#allocation6 + $0x98] sm:$0xff]   ;;  %v1716_v60 = vld [vmem:[#allocation6 + $0xa0] sm:$0xff]  }
 0x12f   :  { %919 = vmatprep.subr.bf16.mxu0 %v1664_v42  ;;  %1483 = vmatprep.subr.bf16.mxu1 %v1665_v43 }
 0x132   :  { %920 = vmatpush1.bf16.msra.mxu0 %v1662_v45  ;;  %1484 = vmatpush3.bf16.msra.mxu1 %v1666_v46 }
 0x133   :  { %921 = vmatprep.subr.bf16.mxu0 %v1669_v47  ;;  %1485 = vmatprep.subr.bf16.mxu1 %v1670_v48 }
 0x136   :  { %922 = vmatpush1.bf16.msra.mxu0 %v1667_v50  ;;  %1486 = vmatpush3.bf16.msra.mxu1 %v1671_v51  ;;  %v1712_v50 = vld [vmem:[#allocation6 + $0x80] sm:$0xff]  }
 0x137   :  { %923 = vmatprep.subr.bf16.mxu0 %v1674_v52  ;;  %1493 = vmatprep.subr.bf16.mxu1 %v1696_v8  ;;  %v1713_v52 = vld [vmem:[#allocation6 + $0x88] sm:$0xff]  }
 0x139   :  { %1021 = vmatmul.mubr.bf16.vlgmr.msra.gmra.mrb[8].mxu1 %v207_v53 }
 0x13a   :  { %924 = vmatpush1.bf16.msra.mxu0 %v1672_v54  ;;  %1494 = vmatpush3.bf16.msra.mxu1 %v1697_v9  ;;  %v1718_v54 = vld [vmem:[#allocation6 + $0xb0] sm:$0xff]  }
 0x13b   :  { %925 = vmatprep.subr.bf16.mxu0 %v1677_v55  ;;  %1495 = vmatprep.subr.bf16.mxu1 %v1698_v10  ;;  %v1719_v55 = vld [vmem:[#allocation6 + $0xb8] sm:$0xff]  }
 0x13e   :  { %926 = vmatpush1.bf16.msra.mxu0 %v1675_v56  ;;  %1496 = vmatpush3.bf16.msra.mxu1 %v1699_v11 }
 0x13f   :  { %927 = vmatprep.subr.bf16.mxu0 %v1680_v59  ;;  %1497 = vmatprep.subr.bf16.mxu1 %v1700_v12 }
 0x142   :  { %928 = vmatpush1.bf16.msra.mxu0 %v1678_v61  ;;  %1498 = vmatpush3.bf16.msra.mxu1 %v1701_v13 }
 0x143   :  { %929 = vmatprep.subr.bf16.mxu0 %v1683_v62  ;;  %1499 = vmatprep.subr.bf16.mxu1 %v1702_v14 }
 0x146   :  { %930 = vmatpush1.bf16.msra.mxu0 %v1681_v63  ;;  %1500 = vmatpush3.bf16.msra.mxu1 %v1703_v15 }
 0x147   :  { %931 = vmatprep.subr.bf16.mxu0 %v1686_v0  ;;  %1501 = vmatprep.subr.bf16.mxu1 %v1704_v16 }
 0x14a   :  { %932 = vmatpush1.bf16.msra.mxu0 %v1684_v1  ;;  %1502 = vmatpush3.bf16.msra.mxu1 %v1705_v17 }
 0x14b   :  { %933 = vmatprep.subr.bf16.mxu0 %v1689_v2  ;;  %1503 = vmatprep.subr.bf16.mxu1 %v1706_v18  ;;  %v1424_v2 = vld [vmem:[%s1928_s6] ss:$0 sm:$0xff] }
 0x14e   :  { %934 = vmatpush1.bf16.msra.mxu0 %v1687_v3  ;;  %1504 = vmatpush3.bf16.msra.mxu1 %v1707_v19 }
 0x14f   :  { %935 = vmatprep.subr.bf16.mxu0 %v1692_v4  ;;  %1505 = vmatprep.subr.bf16.mxu1 %v1708_v20 }
 0x152   :  { %936 = vmatpush1.bf16.msra.mxu0 %v1690_v5  ;;  %1506 = vmatpush3.bf16.msra.mxu1 %v1709_v21 }
 0x153   :  { %937 = vmatprep.subr.bf16.mxu0 %v1695_v6  ;;  %1507 = vmatprep.subr.bf16.mxu1 %v1710_v22 }
 0x156   :  { %938 = vmatpush1.bf16.msra.mxu0 %v1693_v7  ;;  %1508 = vmatpush3.bf16.msra.mxu1 %v1711_v23 }
 0x157   :  { %1524 = vmatprep.subr.bf16.mxu1 %v1802_v24 }
 0x159   :  { %940 = vmatmul.mubr.bf16.vlgmr.msra.gmra.mrb[4].mxu0 %v207_v53  ;;  %v1717_v53 = vld [vmem:[#allocation6 + $0xa8] sm:$0xff]  }
 0x1ec   :  { %v1465_v25 = vpop.f32.mrb[4].mxu1 }
 0x1ed   :  { %v1466_v26 = vpop.f32.mrb[5].mxu1 }
 0x1ee   :  { %v1467_v27 = vadd.f32 %v1466_v26, %v1465_v25  ;;  %v1468_v28 = vpop.f32.mrb[6].mxu1 }
 0x1ef   :  { %v1469_v29 = vpop.f32.mrb[7].mxu1 }
 0x1f0   :  { %v983_v35 = vadd.f32 %v1467_v27, %v350_v31 }
 0x20c   :  { %v1487_v32 = vpop.f32.mrb[8].mxu1 }
 0x20d   :  { %v1488_v33 = vpop.f32.mrb[9].mxu1 }
 0x20e   :  { %v1489_v36 = vadd.f32 %v1488_v33, %v1487_v32  ;;  %v1490_v37 = vpop.f32.mrb[10].mxu1 }
 0x20f   :  { %v1491_v38 = vpop.f32.mrb[11].mxu1 }
 0x210   :  { %v1023_v39 = vadd.f32 %v1489_v36, %v983_v35 }
 0x212   :  { %v1030_v56 = vmax.f32 %v1023_v39, 0.0 }
 0x214   :  { %v1033_v59 = vpack.c.bf16 %v1030_v56, %v1030_v56 }
 0x22c   :  { %v941_v42 = vpop.f32.mrb[4].mxu0 }
 0x22d   :  { %v1544_v43 = vadd.f32 %v941_v42, %v342_v40  ;;  %v943_v44 = vpop.f32.mrb[5].mxu0 }
 0x22e   :  { %v1545_v45 = vadd.f32 %v943_v44, %v346_v41  ;;  %v945_v46 = vpop.f32.mrb[6].mxu0 }
 0x22f   :  { %v1028_v47 = vmax.f32 %v1544_v43, 0.0  ;;  %v946_v34 = vpop.f32.mrb[7].mxu0 }
 0x230   :  { %v1029_v48 = vmax.f32 %v1545_v45, 0.0 }
 0x231   :  { %v1031_v51 = vpack.c.bf16 %v1028_v47, %v1028_v47 }
 0x232   :  { %v1032_v49 = vpack.c.bf16 %v1029_v48, %v1029_v48 }
 0x234   :  { %1265 = vmatprep.mubr.bf16.mxu1 %v1032_v49 }
 0x235   :  { %1266 = vmatmul.mubr.bf16.vlgmr.msra.gmra.mrb[12].mxu1 %v1031_v51 }
 0x236   :  { %1525 = vmatpush3.bf16.msra.mxu1 %v1712_v50  ;;  %1540 = vmatprep.mubr.msk.bf16.mxu1 %vm1803_vm1, %v1802_v24 }
 0x237   :  { %1526 = vmatprep.subr.bf16.mxu1 %v1802_v24 }
 0x23a   :  { %1527 = vmatpush3.bf16.msra.mxu1 %v1713_v52 }
 0x23b   :  { %1528 = vmatprep.subr.bf16.mxu1 %v1802_v24 }
 0x23e   :  { %1529 = vmatpush3.bf16.msra.mxu1 %v1714_v57 }
 0x23f   :  { %1530 = vmatprep.subr.bf16.mxu1 %v1802_v24 }
 0x242   :  { %1531 = vmatpush3.bf16.msra.mxu1 %v1715_v58 }
 0x243   :  { %1532 = vmatprep.subr.bf16.mxu1 %v1802_v24 }
 0x246   :  { %1533 = vmatpush3.bf16.msra.mxu1 %v1716_v60 }
 0x247   :  { %1534 = vmatprep.subr.bf16.mxu1 %v1802_v24 }
 0x24a   :  { %1535 = vmatpush3.bf16.msra.mxu1 %v1717_v53 }
 0x24b   :  { %1536 = vmatprep.subr.bf16.mxu1 %v1802_v24 }
 0x24e   :  { %1537 = vmatpush3.bf16.msra.mxu1 %v1718_v54 }
 0x24f   :  { %1538 = vmatprep.subr.bf16.mxu1 %v1802_v24 }
 0x252   :  { %1539 = vmatpush3.bf16.msra.mxu1 %v1719_v55 }
 0x255   :  { %1541 = vmatmul.mubr.bf16.vlgmr.msra.gmra.mrb[16].mxu1 %v1033_v59 }
 0x308   :  { %v1509_v61 = vpop.f32.mrb[12].mxu1 }
 0x309   :  { %v1510_v62 = vpop.f32.mrb[13].mxu1 }
 0x30a   :  { %v1511_v63 = vadd.f32 %v1510_v62, %v1509_v61  ;;  %v1512_v0 = vpop.f32.mrb[14].mxu1 }
 0x30b   :  { %v1513_v1 = vpop.f32.mrb[15].mxu1 }
 0x30c   :  { %v1268_v3 = vadd.f32 %v1511_v63, %v1424_v2 }
 0x328   :  { %v1307_v4 = vpop.f32.mrb[16].mxu1 }
 0x329   :  { %v1308_v5 = vadd.f32 %v1307_v4, %v1268_v3  ;;  %v1542_v6 = vpop.f32.mrb[17].mxu1 }
 0x32a   :  { %v1310_v7 = vpop.f32.mrb[18].mxu1 }
 0x32b   :  { %1720 = vtanh.f32 %v1308_v5  ;;  %v1543_v8 = vpop.f32.mrb[19].mxu1 }
 0x335   :  { %v1721_v9 = vpop.eup %1720 }
 0x336   :  { %v1314_v10 = vpack.c.bf16 %v1721_v9, %v1721_v9 }
 0x338   :  { %1315 = vst [vmem:[%s1929_s7] sm:$0xf] %v1314_v10 }
 0x339   :  { %1320 = vsyncpa [#allocation3], 1 }
 0x33a   :  { %1321 = vsyncpa [#allocation5], 1 }

</bundles_post_ra>
